<compile_context>
chip_gen: v5e
topology: v5e:2x2
jax: 0.10.0
libtpu: 0.0.40
codegen_flags: <defaults>
</compile_context>

<pallas_src>
import functools

import numpy as np
import jax
import jax.numpy as jnp
from jax.experimental import pallas as pl
from jax.experimental.pallas import tpu as pltpu


# ---------------------------------------------------------------------------
# Pallas kernel: forward pass for one group of stacked graphs
# ---------------------------------------------------------------------------
def _ppo_kernel(a_ref,      # [BgN, BgN]     bf16  block-diagonal normalized adjacency
                x_ref,      # [BgN, C]       bf16  stacked node features
                sel_ref,    # [Bg_pad, BgN]  bf16  per-graph mean-pool selector (1/N)
                w1_ref,     # [C, H]         bf16  conv1 weight
                ws_ref,     # [C, H]         bf16  skip weight
                w2_ref,     # [H, H]         bf16  conv2 weight
                wh_ref,     # [H, 128]       bf16  fused+padded [w_actor | w_critic]
                bias_ref,   # [3, >=128]     f32   rows: b1+bs | b2 | [ba|bc] (padded)
                out_ref):   # [Bg_pad, 128]  f32   dense head slab
    bf16, f32 = jnp.bfloat16, jnp.float32
    hidden = w2_ref.shape[0]
    head_pad = out_ref.shape[-1]

    a = a_ref[...]
    x = x_ref[...]
    bias = bias_ref[...]

    # conv1 + skip, A@X-first:
    #   concat([A@X, X], 1) @ [[W1],[Ws]]  ==  (A@X)@W1 + X@Ws   (no slicing)
    ax = jnp.dot(a, x, preferred_element_type=f32).astype(bf16)          # [BgN, C]
    h = (jnp.dot(ax, w1_ref[...], preferred_element_type=f32)
         + jnp.dot(x, ws_ref[...], preferred_element_type=f32))
    h = jnp.maximum(h + bias[0:1, :hidden], 0.0)                         # [BgN, H]

    # conv2 + residual + ReLU.
    hw = jnp.dot(h.astype(bf16), w2_ref[...], preferred_element_type=f32)
    h2 = jnp.dot(a, hw.astype(bf16), preferred_element_type=f32)
    h2 = jnp.maximum(h2 + bias[1:2, :hidden] + h, 0.0)                   # [BgN, H]

    # Segmented mean pool on the MXU (selector matmul keeps graphs isolated),
    # then the fused actor|critic head -> one dense [Bg_pad, 128] store.
    pooled = jnp.dot(sel_ref[...], h2.astype(bf16),
                     preferred_element_type=f32)                         # [Bg_pad, H]
    out_ref[...] = (jnp.dot(pooled.astype(bf16), wh_ref[...],
                            preferred_element_type=f32)
                    + bias[2:3, :head_pad])


# ---------------------------------------------------------------------------
# Host-side operand packing
# ---------------------------------------------------------------------------
def pack_params(params, num_nodes, batch_per_group, action_dim):
    f32, bf16 = jnp.float32, jnp.bfloat16
    hidden = params["w2"].shape[0]
    head_pad = 128 * max(1, -(-(action_dim + 1) // 128))
    bias_pad = max(head_pad, 128 * -(-hidden // 128))
    bg_pad = 8 * max(1, -(-batch_per_group // 8))

    w1 = params["w1"].astype(bf16)
    ws = params["ws"].astype(bf16)
    w2 = params["w2"].astype(bf16)

    wh = jnp.concatenate([params["wa"], params["wc"]], axis=1)
    wh = jnp.pad(wh, ((0, 0), (0, head_pad - (action_dim + 1)))).astype(bf16)

    # Per-graph mean-pool selector, rows padded to a full sublane tile.
    sel = jnp.repeat(jnp.eye(batch_per_group, dtype=f32), num_nodes, axis=1)
    sel = sel / float(num_nodes)
    sel = jnp.pad(sel, ((0, bg_pad - batch_per_group), (0, 0))).astype(bf16)

    pad_row = lambda v: jnp.pad(v, ((0, 0), (0, bias_pad - v.shape[1])))
    bias = jnp.concatenate([
        pad_row(params["b1"] + params["bs"]),                              # row 0
        pad_row(params["b2"]),                                             # row 1
        pad_row(jnp.concatenate([params["ba"], params["bc"]], axis=1)),    # row 2
    ], axis=0).astype(f32)

    return {"w1": w1, "ws": ws, "w2": w2, "wh": wh, "sel": sel, "bias": bias}


def build_block_diag(a_norm, num_groups):
    """[B, N, N] per-graph adjacencies -> [G, Bg*N, Bg*N] block-diagonal."""
    B, N, _ = a_norm.shape
    bg = B // num_groups
    a = a_norm.reshape(num_groups, bg, N, N)
    eye = jnp.eye(bg, dtype=a_norm.dtype)
    blk = jnp.einsum("gbij,bc->gbicj", a, eye)
    return blk.reshape(num_groups, bg * N, bg * N)


# ---------------------------------------------------------------------------
# Wrapper
# ---------------------------------------------------------------------------
@functools.partial(jax.jit, static_argnames=("action_dim", "batch_per_group"))
def lightning_fast_ppo_forward(a_block, x_stack, packed, *, action_dim,
                               batch_per_group):
    """a_block: [G, Bg*N, Bg*N] f32, x_stack: [G, Bg*N, C] f32
       -> (logits [B, A], values [B, 1]) with B = G * Bg."""
    G, BgN, _ = a_block.shape
    C = x_stack.shape[-1]
    H = packed["w2"].shape[0]
    head_pad = packed["wh"].shape[1]
    bg_pad = packed["sel"].shape[0]
    bg = batch_per_group
    B = G * bg

    a_bf = a_block.astype(jnp.bfloat16)
    x_bf = x_stack.astype(jnp.bfloat16)

    flops = 2 * G * (BgN * BgN * C + 2 * BgN * C * H + BgN * H * H
                     + BgN * BgN * H + bg_pad * BgN * H + bg_pad * H * head_pad)
    bytes_accessed = (a_bf.size * a_bf.dtype.itemsize
                      + x_bf.size * x_bf.dtype.itemsize
                      + sum(int(v.size) * v.dtype.itemsize for v in packed.values())
                      + G * bg_pad * head_pad * 4)

    def full_spec(arr):
        zeros = (0,) * arr.ndim
        return pl.BlockSpec(arr.shape, lambda g, _z=zeros: _z)

    out = pl.pallas_call(
        _ppo_kernel,
        out_shape=jax.ShapeDtypeStruct((G, bg_pad, head_pad), jnp.float32),
        grid=(G,),
        in_specs=[
            pl.BlockSpec((None, BgN, BgN), lambda g: (g, 0, 0)),   # block-diag A
            pl.BlockSpec((None, BgN, C), lambda g: (g, 0, 0)),     # stacked X
            full_spec(packed["sel"]),
            full_spec(packed["w1"]),
            full_spec(packed["ws"]),
            full_spec(packed["w2"]),
            full_spec(packed["wh"]),
            full_spec(packed["bias"]),
        ],
        out_specs=pl.BlockSpec((None, bg_pad, head_pad), lambda g: (g, 0, 0)),
        compiler_params=pltpu.CompilerParams(
            dimension_semantics=("parallel",),
            vmem_limit_bytes=32 * 1024 * 1024),
        cost_estimate=pl.CostEstimate(flops=flops, transcendentals=0,
                                      bytes_accessed=bytes_accessed),
    )(a_bf, x_bf, packed["sel"], packed["w1"], packed["ws"],
      packed["w2"], packed["wh"], packed["bias"])

    head = out[:, :bg, :].reshape(B, head_pad)
    return head[:, :action_dim], head[:, action_dim:action_dim + 1]


# ---------------------------------------------------------------------------
# Glue: dense normalized adjacency (GCNConv w/ self-loops) and params
# ---------------------------------------------------------------------------
def build_norm_adj(edge_index, num_nodes):
    """D^{-1/2} (A + I) D^{-1/2}; A[dst, src] = 1. Self-loops added with max()
    so inputs that already contain self-loops don't get a 2.0 diagonal."""
    src, dst = edge_index[0], edge_index[1]
    adj = jnp.zeros((num_nodes, num_nodes), jnp.float32).at[dst, src].set(1.0)
    adj = jnp.maximum(adj, jnp.eye(num_nodes, dtype=jnp.float32))
    deg = adj.sum(axis=1)
    dinv = jax.lax.rsqrt(deg)
    return dinv[:, None] * adj * dinv[None, :]


def _orthogonal(key, rows, cols, gain):
    n = max(rows, cols)
    a = jax.random.normal(key, (n, n), dtype=jnp.float32)
    q, _ = jnp.linalg.qr(a)
    return (gain * q[:rows, :cols]).astype(jnp.float32)


def init_params(key, in_channels, hidden_dim, action_dim):
    ks = jax.random.split(key, 5)
    gain = 1.4  # nn.init.orthogonal_(m.weight, gain=1.4); biases zero
    return {
        "w1": _orthogonal(ks[0], in_channels, hidden_dim, 1.0),
        "b1": jnp.zeros((1, hidden_dim), jnp.float32),
        "w2": _orthogonal(ks[1], hidden_dim, hidden_dim, 1.0),
        "b2": jnp.zeros((1, hidden_dim), jnp.float32),
        "ws": _orthogonal(ks[2], in_channels, hidden_dim, gain),
        "bs": jnp.zeros((1, hidden_dim), jnp.float32),
        "wa": _orthogonal(ks[3], hidden_dim, action_dim, gain),
        "ba": jnp.zeros((1, action_dim), jnp.float32),
        "wc": _orthogonal(ks[4], hidden_dim, 1, gain),
        "bc": jnp.zeros((1, 1), jnp.float32),
    }


# Pure-JAX reference mirroring the kernel's exact math (bf16 dot operands).
def reference_forward(a_bf, x_bf, packed, hidden_dim, action_dim, batch_per_group):
    f32, bf16 = jnp.float32, jnp.bfloat16
    dot = lambda u, v: jnp.dot(u.astype(bf16), v.astype(bf16),
                               preferred_element_type=f32)
    bias = packed["bias"]
    H = hidden_dim
    head_pad = packed["wh"].shape[1]
    ax = dot(a_bf, x_bf)
    h = dot(ax, packed["w1"]) + dot(x_bf, packed["ws"])
    h = jnp.maximum(h + bias[0:1, :H], 0.0)
    hw = dot(h, packed["w2"])
    h2 = jnp.maximum(dot(a_bf, hw) + bias[1:2, :H] + h, 0.0)
    pooled = dot(packed["sel"], h2)
    head = dot(pooled, packed["wh"]) + bias[2:3, :head_pad]
    head = head[:batch_per_group]
    return head[:, :action_dim], head[:, action_dim:action_dim + 1]


if __name__ == "__main__":
    # Small shapes consistent with the module.
    B, N, IN_CHANNELS, HIDDEN_DIM, ACTION_DIM = 4, 8, 4, 32, 8
    NUM_GROUPS = 2          # 2 parallel grid steps (feeds both v7x TCs); on
    BG = B // NUM_GROUPS    # v5e/v6e the axis is just a 2-iteration loop.

    key = jax.random.PRNGKey(0)
    k_x, k_p = jax.random.split(key)

    # Deterministic graphs: ring with stride (b+1) per batch element, undirected.
    adjs = []
    for b in range(B):
        src = np.arange(N)
        dst = (src + b + 1) % N
        edge_index = jnp.asarray(
            np.stack([np.concatenate([src, dst]), np.concatenate([dst, src])]),
            dtype=jnp.int32)
        adjs.append(build_norm_adj(edge_index, N))
    a_norm = jnp.stack(adjs)                                    # [B, N, N]
    a_block = build_block_diag(a_norm, NUM_GROUPS)              # [G, Bg*N, Bg*N]

    x = jax.random.normal(k_x, (B, N, IN_CHANNELS), dtype=jnp.float32)
    x_stack = x.reshape(NUM_GROUPS, BG * N, IN_CHANNELS)        # [G, Bg*N, C]

    params = init_params(k_p, IN_CHANNELS, HIDDEN_DIM, ACTION_DIM)
    packed = pack_params(params, N, BG, ACTION_DIM)

    logits, values = lightning_fast_ppo_forward(
        a_block, x_stack, packed, action_dim=ACTION_DIM, batch_per_group=BG)
    jax.block_until_ready((logits, values))

    # Reference check (mirrors kernel numerics: bf16 dot operands, f32 accum).
    ref_fn = lambda a1, x1: reference_forward(a1, x1, packed,
                                              HIDDEN_DIM, ACTION_DIM, BG)
    ref_logits, ref_values = jax.vmap(ref_fn)(a_block, x_stack)
    ref_logits = ref_logits.reshape(B, ACTION_DIM)
    ref_values = ref_values.reshape(B, 1)

    assert logits.shape == (B, ACTION_DIM) and values.shape == (B, 1)
    assert jnp.allclose(logits, ref_logits, atol=1e-3, rtol=1e-3)
    assert jnp.allclose(values, ref_values, atol=1e-3, rtol=1e-3)

    print("KERNEL_OK")
</pallas_src>

<mosaic_0001>
module attributes {stable_mosaic.version = 11 : i64} {
  func.func @_ppo_kernel(%arg0: i32, %arg1: memref<1x16x16xbf16, #tpu.memory_space<vmem>>, %arg2: memref<1x16x4xbf16, #tpu.memory_space<vmem>>, %arg3: memref<8x16xbf16, #tpu.memory_space<vmem>>, %arg4: memref<4x32xbf16, #tpu.memory_space<vmem>>, %arg5: memref<4x32xbf16, #tpu.memory_space<vmem>>, %arg6: memref<32x32xbf16, #tpu.memory_space<vmem>>, %arg7: memref<32x128xbf16, #tpu.memory_space<vmem>>, %arg8: memref<3x128xf32, #tpu.memory_space<vmem>>, %arg9: memref<1x8x128xf32, #tpu.memory_space<vmem>>) attributes {dimension_semantics = [#tpu.dimension_semantics<parallel>], iteration_bounds = array<i64: 2>, scalar_prefetch = 0 : i64, scratch_operands = 0 : i64, tpu.core_type = #tpu.core_type<tc>, window_params = [{transform_indices = @transform_0, window_bounds = array<i64: 1, 16, 16>}, {transform_indices = @transform_1, window_bounds = array<i64: 1, 16, 4>}, {pipeline_mode = #tpu.pipeline_mode<synchronous>, transform_indices = @transform_2, window_bounds = array<i64: 8, 16>}, {pipeline_mode = #tpu.pipeline_mode<synchronous>, transform_indices = @transform_3, window_bounds = array<i64: 4, 32>}, {pipeline_mode = #tpu.pipeline_mode<synchronous>, transform_indices = @transform_4, window_bounds = array<i64: 4, 32>}, {pipeline_mode = #tpu.pipeline_mode<synchronous>, transform_indices = @transform_5, window_bounds = array<i64: 32, 32>}, {pipeline_mode = #tpu.pipeline_mode<synchronous>, transform_indices = @transform_6, window_bounds = array<i64: 32, 128>}, {pipeline_mode = #tpu.pipeline_mode<synchronous>, transform_indices = @transform_7, window_bounds = array<i64: 3, 128>}, {transform_indices = @transform_8, window_bounds = array<i64: 1, 8, 128>}]} {
    %c0 = arith.constant 0 : index
    %c0_0 = arith.constant 0 : index
    %c0_1 = arith.constant 0 : index
    %0 = vector.load %arg1[%c0, %c0_0, %c0_1] : memref<1x16x16xbf16, #tpu.memory_space<vmem>>, vector<1x16x16xbf16>
    %1 = vector.shape_cast %0 : vector<1x16x16xbf16> to vector<16x16xbf16>
    %c0_2 = arith.constant 0 : index
    %c0_3 = arith.constant 0 : index
    %c0_4 = arith.constant 0 : index
    %2 = vector.load %arg2[%c0_2, %c0_3, %c0_4] : memref<1x16x4xbf16, #tpu.memory_space<vmem>>, vector<1x16x4xbf16>
    %3 = vector.shape_cast %2 : vector<1x16x4xbf16> to vector<16x4xbf16>
    %c0_5 = arith.constant 0 : index
    %c0_6 = arith.constant 0 : index
    %4 = vector.load %arg8[%c0_5, %c0_6] : memref<3x128xf32, #tpu.memory_space<vmem>>, vector<3x128xf32>
    %cst = arith.constant dense<0.000000e+00> : vector<16x4xf32>
    %5 = tpu.matmul %1, %3, %cst {dimension_numbers = #tpu.dot_dimension_numbers<[1], [0], [0], [1], [0, 0, 1, 1], [], []>} : vector<16x16xbf16>, vector<16x4xbf16>, vector<16x4xf32> -> vector<16x4xf32>
    %6 = arith.truncf %5 : vector<16x4xf32> to vector<16x4xbf16>
    %c0_7 = arith.constant 0 : index
    %c0_8 = arith.constant 0 : index
    %7 = vector.load %arg4[%c0_7, %c0_8] : memref<4x32xbf16, #tpu.memory_space<vmem>>, vector<4x32xbf16>
    %cst_9 = arith.constant dense<0.000000e+00> : vector<16x32xf32>
    %8 = tpu.matmul %6, %7, %cst_9 {dimension_numbers = #tpu.dot_dimension_numbers<[1], [0], [0], [1], [0, 0, 1, 1], [], []>} : vector<16x4xbf16>, vector<4x32xbf16>, vector<16x32xf32> -> vector<16x32xf32>
    %c0_10 = arith.constant 0 : index
    %c0_11 = arith.constant 0 : index
    %9 = vector.load %arg5[%c0_10, %c0_11] : memref<4x32xbf16, #tpu.memory_space<vmem>>, vector<4x32xbf16>
    %cst_12 = arith.constant dense<0.000000e+00> : vector<16x32xf32>
    %10 = tpu.matmul %3, %9, %cst_12 {dimension_numbers = #tpu.dot_dimension_numbers<[1], [0], [0], [1], [0, 0, 1, 1], [], []>} : vector<16x4xbf16>, vector<4x32xbf16>, vector<16x32xf32> -> vector<16x32xf32>
    %11 = arith.addf %8, %10 : vector<16x32xf32>
    %12 = vector.extract_strided_slice %4 {offsets = [0, 0], sizes = [1, 32], strides = [1, 1]} : vector<3x128xf32> to vector<1x32xf32>
    %13 = vector.broadcast %12 : vector<1x32xf32> to vector<16x32xf32>
    %14 = arith.addf %11, %13 : vector<16x32xf32>
    %cst_13 = arith.constant 0.000000e+00 : f32
    %15 = vector.broadcast %cst_13 : f32 to vector<16x32xf32>
    %16 = arith.maximumf %14, %15 : vector<16x32xf32>
    %17 = arith.truncf %16 : vector<16x32xf32> to vector<16x32xbf16>
    %c0_14 = arith.constant 0 : index
    %c0_15 = arith.constant 0 : index
    %18 = vector.load %arg6[%c0_14, %c0_15] : memref<32x32xbf16, #tpu.memory_space<vmem>>, vector<32x32xbf16>
    %cst_16 = arith.constant dense<0.000000e+00> : vector<16x32xf32>
    %19 = tpu.matmul %17, %18, %cst_16 {dimension_numbers = #tpu.dot_dimension_numbers<[1], [0], [0], [1], [0, 0, 1, 1], [], []>} : vector<16x32xbf16>, vector<32x32xbf16>, vector<16x32xf32> -> vector<16x32xf32>
    %20 = arith.truncf %19 : vector<16x32xf32> to vector<16x32xbf16>
    %cst_17 = arith.constant dense<0.000000e+00> : vector<16x32xf32>
    %21 = tpu.matmul %1, %20, %cst_17 {dimension_numbers = #tpu.dot_dimension_numbers<[1], [0], [0], [1], [0, 0, 1, 1], [], []>} : vector<16x16xbf16>, vector<16x32xbf16>, vector<16x32xf32> -> vector<16x32xf32>
    %22 = vector.extract_strided_slice %4 {offsets = [1, 0], sizes = [1, 32], strides = [1, 1]} : vector<3x128xf32> to vector<1x32xf32>
    %23 = vector.broadcast %22 : vector<1x32xf32> to vector<16x32xf32>
    %24 = arith.addf %21, %23 : vector<16x32xf32>
    %25 = arith.addf %24, %16 : vector<16x32xf32>
    %cst_18 = arith.constant 0.000000e+00 : f32
    %26 = vector.broadcast %cst_18 : f32 to vector<16x32xf32>
    %27 = arith.maximumf %25, %26 : vector<16x32xf32>
    %c0_19 = arith.constant 0 : index
    %c0_20 = arith.constant 0 : index
    %28 = vector.load %arg3[%c0_19, %c0_20] : memref<8x16xbf16, #tpu.memory_space<vmem>>, vector<8x16xbf16>
    %29 = arith.truncf %27 : vector<16x32xf32> to vector<16x32xbf16>
    %cst_21 = arith.constant dense<0.000000e+00> : vector<8x32xf32>
    %30 = tpu.matmul %28, %29, %cst_21 {dimension_numbers = #tpu.dot_dimension_numbers<[1], [0], [0], [1], [0, 0, 1, 1], [], []>} : vector<8x16xbf16>, vector<16x32xbf16>, vector<8x32xf32> -> vector<8x32xf32>
    %31 = arith.truncf %30 : vector<8x32xf32> to vector<8x32xbf16>
    %c0_22 = arith.constant 0 : index
    %c0_23 = arith.constant 0 : index
    %32 = vector.load %arg7[%c0_22, %c0_23] : memref<32x128xbf16, #tpu.memory_space<vmem>>, vector<32x128xbf16>
    %cst_24 = arith.constant dense<0.000000e+00> : vector<8x128xf32>
    %33 = tpu.matmul %31, %32, %cst_24 {dimension_numbers = #tpu.dot_dimension_numbers<[1], [0], [0], [1], [0, 0, 1, 1], [], []>} : vector<8x32xbf16>, vector<32x128xbf16>, vector<8x128xf32> -> vector<8x128xf32>
    %34 = vector.extract_strided_slice %4 {offsets = [2, 0], sizes = [1, 128], strides = [1, 1]} : vector<3x128xf32> to vector<1x128xf32>
    %35 = vector.broadcast %34 : vector<1x128xf32> to vector<8x128xf32>
    %36 = arith.addf %33, %35 : vector<8x128xf32>
    %c0_25 = arith.constant 0 : index
    %c0_26 = arith.constant 0 : index
    %c0_27 = arith.constant 0 : index
    %37 = vector.load %arg9[%c0_25, %c0_26, %c0_27] : memref<1x8x128xf32, #tpu.memory_space<vmem>>, vector<1x8x128xf32>
    %38 = vector.shape_cast %37 : vector<1x8x128xf32> to vector<8x128xf32>
    %39 = vector.shape_cast %36 : vector<8x128xf32> to vector<1x8x128xf32>
    tpu.vector_store %arg9[%c0_25, %c0_26, %c0_27], %39 {strides = array<i32>} : memref<1x8x128xf32, #tpu.memory_space<vmem>>, vector<1x8x128xf32>,
    return
  }
  func.func @transform_0(%arg0: i32) -> (i32, i32, i32) {
    %c0_i32 = arith.constant 0 : i32
    %c0_i32_0 = arith.constant 0 : i32
    %c0_i32_1 = arith.constant 0 : i32
    return %arg0, %c0_i32, %c0_i32_0 : i32, i32, i32
  }
  func.func @transform_1(%arg0: i32) -> (i32, i32, i32) {
    %c0_i32 = arith.constant 0 : i32
    %c0_i32_0 = arith.constant 0 : i32
    %c0_i32_1 = arith.constant 0 : i32
    return %arg0, %c0_i32, %c0_i32_0 : i32, i32, i32
  }
  func.func @transform_2(%arg0: i32) -> (i32, i32) {
    %c0_i32 = arith.constant 0 : i32
    %c0_i32_0 = arith.constant 0 : i32
    %c0_i32_1 = arith.constant 0 : i32
    return %c0_i32, %c0_i32_0 : i32, i32
  }
  func.func @transform_3(%arg0: i32) -> (i32, i32) {
    %c0_i32 = arith.constant 0 : i32
    %c0_i32_0 = arith.constant 0 : i32
    %c0_i32_1 = arith.constant 0 : i32
    return %c0_i32, %c0_i32_0 : i32, i32
  }
  func.func @transform_4(%arg0: i32) -> (i32, i32) {
    %c0_i32 = arith.constant 0 : i32
    %c0_i32_0 = arith.constant 0 : i32
    %c0_i32_1 = arith.constant 0 : i32
    return %c0_i32, %c0_i32_0 : i32, i32
  }
  func.func @transform_5(%arg0: i32) -> (i32, i32) {
    %c0_i32 = arith.constant 0 : i32
    %c0_i32_0 = arith.constant 0 : i32
    %c0_i32_1 = arith.constant 0 : i32
    return %c0_i32, %c0_i32_0 : i32, i32
  }
  func.func @transform_6(%arg0: i32) -> (i32, i32) {
    %c0_i32 = arith.constant 0 : i32
    %c0_i32_0 = arith.constant 0 : i32
    %c0_i32_1 = arith.constant 0 : i32
    return %c0_i32, %c0_i32_0 : i32, i32
  }
  func.func @transform_7(%arg0: i32) -> (i32, i32) {
    %c0_i32 = arith.constant 0 : i32
    %c0_i32_0 = arith.constant 0 : i32
    %c0_i32_1 = arith.constant 0 : i32
    return %c0_i32, %c0_i32_0 : i32, i32
  }
  func.func @transform_8(%arg0: i32) -> (i32, i32, i32) {
    %c0_i32 = arith.constant 0 : i32
    %c0_i32_0 = arith.constant 0 : i32
    %c0_i32_1 = arith.constant 0 : i32
    return %arg0, %c0_i32, %c0_i32_0 : i32, i32, i32
  }
}

</mosaic_0001>

<bundles_post_ra>
// kernel: lightning_fast_ppo_forward.1
= control target key start
LH: loop header
LB: loop body
LE: loop exit
PB: predicated region body
PF: predicated region fallthrough
CT: control target
= control target key end

     0   :  { %s694_s27 = smov 0   ;;  %s748_s0 = inlined_call_operand.vmem [shape: bf16[2,16,16], index: 0, kind: input, shape index: {}]   ;;  %s749_s1 = inlined_call_operand.vmem [shape: bf16[2,16,4], index: 1, kind: input, shape index: {}]   ;;  %s750_s2 = inlined_call_operand.vmem [shape: bf16[8,16], index: 2, kind: input, shape index: {}]   ;;  %s751_s3 = inlined_call_operand.vmem [shape: bf16[4,32], index: 3, kind: input, shape index: {}]   ;;  %s752_s4 = inlined_call_operand.vmem [shape: bf16[4,32], index: 4, kind: input, shape index: {}]   ;;  %s753_s5 = inlined_call_operand.vmem [shape: bf16[32,32], index: 5, kind: input, shape index: {}]   ;;  %s754_s6 = inlined_call_operand.vmem [shape: bf16[32,128], index: 6, kind: input, shape index: {}]   ;;  %s755_s7 = inlined_call_operand.vmem [shape: f32[3,128], index: 7, kind: input, shape index: {}]   ;;  %s756_s8 = inlined_call_operand.vmem [shape: f32[2,8,128], index: 8, kind: output, shape index: {}]  }
   0x1 LB: > { %s582_s28 = sadd.s32 4294967295, %s647_s27   ;;  %p586_p0 = scmp.ge.s32.totalorder %s647_s27, 1  ;;  %s647_s27 = sphi %s694_s27, %s18_s27  }
   0x2   : > { %p272_p1 = scmp.lt.s32.totalorder %s647_s27, 3 }
   0x4   : > { %p273_p2 = pnand %p586_p0, %p272_p1 }
   0x5   : > { %p310_p3 = scmp.lt.s32.totalorder (!%p273_p2), %s582_s28, 1 }
   0x6   : > { %276 = sbr.rel (%p273_p2) target bundleno = 860 (0x35c), region = 52 }
   0xb   : > { %s758_s28 = smov (!%p310_p3, %s582_s28), 1  ;;  %vm341_vm0 = vcmask 130048   ;;  %v361_v2 = vld [vmem:[%s752_s4] sm:$0x3]  ;;  %vm366_vm1 = vcmask 1041408   ;;  %vm362_vm2 = vcmask 31744  }
   0xc   : > { %s702_s29 = sshll.u32 %s758_s28, 3  ;;  %v368_v3 = vsel %vm366_vm1, %v361_v2, 0  ;;  %v360_v4 = vld [vmem:[%s751_s3] sm:$0x3]  ;;  %v630_v9 = vld [vmem:[%s753_s5 + $0x8] sm:$0xff]  ;;  %vm426_vm3 = vcmask 261120  }
   0xd   : > { %s319_s10 = scalar_lea.vmem %s749_s1, %s702_s29  ;;  %s314_s13 = scalar_lea.vmem %s748_s0, %s702_s29  ;;  %377 = vmatpush.bf16.msra.mxu1 %v368_v3  ;;  %v388_v5 = vsel %vm366_vm1, %v360_v4, 0  ;;  %436 = vmatpush.bf16.msra.mxu3 %v630_v9  ;;  %v629_v10 = vld [vmem:[%s753_s5] sm:$0xff]  ;;  %v632_v27 = vld [vmem:[%s754_s6 + $0x8] sm:$0xff] }
   0xe   : > { %v628_v0 = vld [vmem:[%s319_s10] sm:$0xff]  ;;  %397 = vmatpush.bf16.msra.mxu2 %v388_v5  ;;  %s323_s12 = scalar_lea.vmem %s756_s8, %s702_s29 }
   0xf   : > { %v627_v1 = vld [vmem:[%s314_s13] sm:$0xff]  ;;  %352 = vmatpush.bf16.msra.mxu0 %v628_v0 }
  0x10   : > { %601 = vmatmul.msk.bf16.vlgmr.msra.gmra.mxu1 %vm362_vm2, %v628_v0  ;;  %v329_v13 = vld [vmem:[%s755_s7] sm:$0x7] }
  0x11   : > { %437 = vmatpush.bf16.msra.mxu3 %v629_v10  ;;  %v404_v15 = vperm.slane %v329_v13, 0  ;;  %v445_v29 = vperm.slane %v329_v13, 1  ;;  %v464_v38 = vld [vmem:[%s750_s2] sm:$0xf]  ;;  %v487_v43 = vperm.slane %v329_v13, 2 }
  0x12   : > { %600 = vmatmul.msk.bf16.vlgmr.msra.gmra.mxu0 %vm341_vm0, %v627_v1  ;;  %509 = vmatpush.bf16.msrb.mxu2 %v632_v27  ;;  %v631_v39 = vld [vmem:[%s754_s6] sm:$0xff] }
  0x16   : > { %510 = vmatpush.bf16.msrb.mxu2 %v631_v39 }
  0x8d   : > { %v379_v11 = vpop.f32.mrf.mxu1 }
  0x8f   : > { %v354_v6 = vpop.f32.mrf.mxu0 }
  0x95   : > { %v381_v16 = vpop.f32.mrf.mxu1 }
  0x97   : > { %v356_v7 = vpop.f32.mrf.mxu0 }
  0x98   : > { %v359_v8 = vpack.c.bf16 %v356_v7, %v354_v6 }
  0x9a   : > { %602 = vmatmul.msk.bf16.vlgmr.msra.gmra.mxu2 %vm362_vm2, %v359_v8 }
 0x11d   : > { %v399_v12 = vpop.f32.mrf.mxu2 }
 0x11e   : > { %v400_v14 = vadd.f32 %v399_v12, %v379_v11 }
 0x120   : > { %v405_v18 = vadd.f32 %v404_v15, %v400_v14 }
 0x122   : > { %v407_v21 = vmax.f32 %v405_v18, 0.0 }
 0x125   : > { %v401_v17 = vpop.f32.mrf.mxu2 }
 0x126   : > { %v402_v19 = vadd.f32 %v401_v17, %v381_v16 }
 0x128   : > { %v406_v20 = vadd.f32 %v404_v15, %v402_v19 }
 0x12a   : > { %v408_v22 = vmax.f32 %v406_v20, 0.0 }
 0x12c   : > { %v409_v23 = vpack.c.bf16 %v408_v22, %v407_v21 }
 0x12e   : > { %611 = vmatmul.msk.bf16.vlgmr.msra.gmra.mxu3 %vm426_vm3, %v409_v23 }
 0x1b1   : > { %v439_v24 = vpop.f32.mrf.mxu3 }
 0x1b9   : > { %v441_v25 = vpop.f32.mrf.mxu3 }
 0x1ba   : > { %v444_v26 = vpack.c.bf16 %v441_v25, %v439_v24 }
 0x1bc   : > { %453 = vmatpush.bf16.msrb.mxu0 %v444_v26 }
 0x1bf   : > { %612 = vmatmul.msk.bf16.vlgmr.msrb.gmra.mxu0 %vm341_vm0, %v627_v1 }
 0x23c   : > { %v455_v28 = vpop.f32.mrf.mxu0 }
 0x23d   : > { %v456_v30 = vadd.f32 %v455_v28, %v445_v29 }
 0x23f   : > { %v460_v32 = vadd.f32 %v456_v30, %v407_v21 }
 0x241   : > { %v462_v35 = vmax.f32 %v460_v32, 0.0 }
 0x244   : > { %v457_v31 = vpop.f32.mrf.mxu0 }
 0x245   : > { %v458_v33 = vadd.f32 %v457_v31, %v445_v29 }
 0x247   : > { %v461_v34 = vadd.f32 %v458_v33, %v408_v22 }
 0x249   : > { %v463_v36 = vmax.f32 %v461_v34, 0.0 }
 0x24b   : > { %v465_v37 = vpack.c.bf16 %v463_v36, %v462_v35 }
 0x24d   : > { %476 = vmatpush.bf16.msrb.mxu1 %v465_v37 }
 0x250   : > { %613 = vmatmul.msk.bf16.vlgmr.msrb.gmra.mxu1 %vm341_vm0, %v464_v38 }
 0x2cd   : > { %v478_v40 = vpop.f32.mrf.mxu1 }
 0x2ce   : > { %v482_v41 = vpack.c.bf16 %v478_v40, %v478_v40 }
 0x2d0   : > { %622 = vmatmul.msk.bf16.vlgmr.msrb.gmra.mxu2 %vm426_vm3, %v482_v41 }
 0x2d5   : > { %v480_v42 = vpop.f32.mrf.mxu1 }
 0x353   : > { %v512_v44 = vpop.f32.mrf.mxu2 }
 0x354   : > { %v513_v45 = vadd.f32 %v512_v44, %v487_v43 }
 0x356   : > { %516 = vst [vmem:[%s323_s12] sm:$0xff] %v513_v45 }
 0x35b   : > { %v514_v46 = vpop.f32.mrf.mxu2 }
 0x35c PF: > { %s18_s27 = sadd.s32 1, %s647_s27  }
 0x35d   : > { %p15_p4 = scmp.ge.s32.totalorder %s18_s27, 4  }
 0x35f   :  { %17 = sbr.rel (!%p15_p4) target bundleno = 1 (0x1), region = 85 }

</bundles_post_ra>
